<compile_context>
chip_gen: v6e
topology: v6e:2x2x1
jax: 0.10.0
libtpu: 0.0.40
codegen_flags: <defaults>
</compile_context>

<pallas_src>
import functools

import jax
import jax.numpy as jnp
from jax.experimental import pallas as pl
from jax.experimental.pallas import tpu as pltpu


def baseline_fwd_kernel(x_ref, w_ref, sel_ref, b_ref, o_ref, acc_ref, *,
                        hw, thw, need_mask):
    """Grid axis 0 = HW tiles (sequential reduction, 'arbitrary').

    x_ref  : (R, thw)  raw pixels; R = N*C on sublanes (dense), HW on lanes
    w_ref  : (R, F)    per-row fused weight  (= tile(w_fused, N) * 1/HW)
    sel_ref: (N, R)    0/1 row->batch selection matrix
    b_ref  : (1, F)    fused bias
    o_ref  : (N, F)    head output (written once, on the last grid step)
    acc_ref: (R, thw)  f32 scratch; lane-wide running sum (pure VPU adds per step)
    """
    k = pl.program_id(0)

    @pl.when(k == 0)
    def _():
        acc_ref[...] = jnp.zeros_like(acc_ref)

    xt = x_ref[...].astype(jnp.float32)
    if need_mask:
        # Last tile may run past the true HW extent (partial block): zero the tail.
        col = jax.lax.broadcasted_iota(jnp.int32, xt.shape, 1) + k * thw
        xt = jnp.where(col < hw, xt, 0.0)

    # Hot loop: pure elementwise vld/vadd/vst; cross-lane reduce deferred to epilogue.
    acc_ref[...] += xt

    @pl.when(k == pl.num_programs(0) - 1)
    def _():
        # Single deferred cross-lane reduce: (R, thw) -> (R, 1).
        pooled = jnp.sum(acc_ref[...], axis=-1, keepdims=True)            # (R, 1)
        contrib = pooled * w_ref[...]                                      # (R, F)
        # Tiny once-only MXU dot: (N, R) @ (R, F); preprocess + conv + BN all folded in.
        out = jnp.dot(sel_ref[...], contrib,
                      preferred_element_type=jnp.float32) + b_ref[...]     # (N, F)
        o_ref[...] = out.astype(o_ref.dtype)


def _pick_hw_tile(rows, hw, target_block_bytes, itemsize):
    """Lane-dim tile: multiple of 128, sized from a per-block byte budget."""
    budget = max(target_block_bytes // (rows * itemsize), 128)
    thw = max((budget // 128) * 128, 128)
    hw128 = ((hw + 127) // 128) * 128
    return min(thw, hw128)


def baseline_forward(images_nchw, pixel_mean, pixel_std, w_backbone,
                     bn_gamma, bn_beta, bn_rmean, bn_rvar, *,
                     hw_block_bytes=4 << 20):
    """images_nchw: (N, C, H, W). Returns eval-mode head output (N, in_feat) in f32."""
    N, C, H, W = images_nchw.shape
    F = w_backbone.shape[1]
    HW = H * W
    R = N * C
    eps = 1e-5

    # NCHW -> (N*C, HW): contiguous (free) reshape; sublane-dense rows, HW lane-dense.
    x = images_nchw.reshape(R, HW)

    # ---- fold preprocess ((x-mean)/std), eval-mode BN, and 1/HW into weight + bias ----
    inv_std = 1.0 / pixel_std                                    # (C,)
    bn_scale = bn_gamma * jax.lax.rsqrt(bn_rvar + eps)           # (F,)
    w_pre = w_backbone * inv_std[:, None]                        # (C, F)
    b_pre = -(pixel_mean * inv_std) @ w_backbone                 # (F,)
    w_fused = (w_pre * bn_scale[None, :]).astype(jnp.float32)    # (C, F)
    b_fused = ((b_pre - bn_rmean) * bn_scale + bn_beta).reshape(1, F).astype(jnp.float32)
    # Per-row (N*C) weight with the avg-pool 1/HW folded in, plus a 0/1 row->batch map.
    w_exp = (jnp.tile(w_fused, (N, 1)) * (1.0 / HW)).astype(jnp.float32)            # (R, F)
    sel = (jnp.arange(N)[:, None] == (jnp.arange(R) // C)[None, :]).astype(jnp.float32)  # (N, R)

    # ---- HW tile from a byte budget (2-8 MiB class blocks); cdiv grid + in-kernel mask ----
    itemsize = jnp.dtype(x.dtype).itemsize
    thw = _pick_hw_tile(R, HW, hw_block_bytes, itemsize)
    n_tiles = -(-HW // thw)
    need_mask = (HW % thw) != 0

    # Explicit VMEM budget: double/triple-buffered x block + f32 accumulator + small tensors.
    block_bytes = R * thw * itemsize
    vmem_need = (3 * block_bytes + R * thw * 4
                 + 2 * (R * F + N * R + F + N * F) * 4 + (4 << 20))
    vmem_limit = int(min(max(vmem_need, 16 << 20), 48 << 20))   # stays within v7x's 64 MiB

    grid_spec = pltpu.PrefetchScalarGridSpec(
        num_scalar_prefetch=0,
        grid=(n_tiles,),
        in_specs=[
            pl.BlockSpec((R, thw), lambda k: (0, k)),   # raw pixels, HW-tiled, sublane-dense
            pl.BlockSpec((R, F), lambda k: (0, 0)),     # fused per-row weight
            pl.BlockSpec((N, R), lambda k: (0, 0)),     # row->batch selection
            pl.BlockSpec((1, F), lambda k: (0, 0)),     # fused bias
        ],
        out_specs=pl.BlockSpec((N, F), lambda k: (0, 0)),        # whole-batch output block
        scratch_shapes=[pltpu.VMEM((R, thw), jnp.float32)],      # lane-wide f32 accumulator
    )

    kernel = functools.partial(baseline_fwd_kernel, hw=HW, thw=thw, need_mask=need_mask)

    return pl.pallas_call(
        kernel,
        out_shape=jax.ShapeDtypeStruct((N, F), jnp.float32),
        grid_spec=grid_spec,
        compiler_params=pltpu.CompilerParams(
            dimension_semantics=("arbitrary",),         # HW axis is a reduction
            vmem_limit_bytes=vmem_limit),
    )(x, w_exp, sel, b_fused)


def baseline_forward_ref(images_nchw, pixel_mean, pixel_std, w_backbone,
                         bn_gamma, bn_beta, bn_rmean, bn_rvar):
    """Pure-JAX reference mirroring the PyTorch module semantics (original op order)."""
    N, C, H, W = images_nchw.shape
    x = (images_nchw - pixel_mean.reshape(1, C, 1, 1)) / pixel_std.reshape(1, C, 1, 1)
    x = jnp.transpose(x, (0, 2, 3, 1)).reshape(N, H * W, C)
    feat = jnp.einsum('npc,cf->npf', x, w_backbone)              # 1x1 conv backbone stand-in
    pooled = jnp.mean(feat, axis=1)                              # AdaptiveAvgPool2d(1)
    eps = 1e-5
    return bn_gamma * (pooled - bn_rmean) / jnp.sqrt(bn_rvar + eps) + bn_beta


if __name__ == "__main__":
    # Small, module-consistent shapes.
    N, C, H, W = 2, 4, 16, 16     # images: NCHW
    IN_FEAT = 128                 # cfg.MODEL.HEADS.IN_FEAT (stand-in)

    key = jax.random.PRNGKey(0)
    k_img, k_w, k_g, k_b, k_rm, k_rv = jax.random.split(key, 6)

    images = jax.random.normal(k_img, (N, C, H, W), dtype=jnp.float32) * 50.0 + 100.0

    # Deterministic "buffers"/params (module __init__ shapes; synthetic values).
    pixel_mean = jnp.linspace(100.0, 130.0, C, dtype=jnp.float32)   # cfg.MODEL.PIXEL_MEAN
    pixel_std = jnp.linspace(50.0, 70.0, C, dtype=jnp.float32)      # cfg.MODEL.PIXEL_STD
    w_backbone = jax.random.normal(k_w, (C, IN_FEAT), dtype=jnp.float32) * 0.1
    bn_gamma = 1.0 + 0.01 * jax.random.normal(k_g, (IN_FEAT,), dtype=jnp.float32)
    bn_beta = 0.01 * jax.random.normal(k_b, (IN_FEAT,), dtype=jnp.float32)
    bn_rmean = 0.05 * jax.random.normal(k_rm, (IN_FEAT,), dtype=jnp.float32)
    bn_rvar = jnp.abs(jax.random.normal(k_rv, (IN_FEAT,), dtype=jnp.float32)) + 0.5

    out = baseline_forward(images, pixel_mean, pixel_std, w_backbone,
                           bn_gamma, bn_beta, bn_rmean, bn_rvar)
    out = jax.block_until_ready(out)

    ref = baseline_forward_ref(images, pixel_mean, pixel_std, w_backbone,
                               bn_gamma, bn_beta, bn_rmean, bn_rvar)

    assert out.shape == (N, IN_FEAT)
    assert jnp.allclose(out, ref, atol=1e-4, rtol=1e-4), \
        f"max abs err = {jnp.max(jnp.abs(out - ref))}"
    print("KERNEL_OK")
</pallas_src>

<mosaic_0001>
module attributes {stable_mosaic.version = 11 : i64} {
  func.func @baseline_fwd_kernel(%arg0: i32, %arg1: memref<8x256xf32, #tpu.memory_space<vmem>>, %arg2: memref<8x128xf32, #tpu.memory_space<vmem>>, %arg3: memref<2x8xf32, #tpu.memory_space<vmem>>, %arg4: memref<1x128xf32, #tpu.memory_space<vmem>>, %arg5: memref<2x128xf32, #tpu.memory_space<vmem>>, %arg6: memref<8x256xf32, #tpu.memory_space<vmem>>) attributes {dimension_semantics = [#tpu.dimension_semantics<arbitrary>], iteration_bounds = array<i64: 1>, scalar_prefetch = 0 : i64, scratch_operands = 1 : i64, tpu.core_type = #tpu.core_type<tc>, window_params = [{transform_indices = @transform_0, window_bounds = array<i64: 8, 256>}, {pipeline_mode = #tpu.pipeline_mode<synchronous>, transform_indices = @transform_1, window_bounds = array<i64: 8, 128>}, {pipeline_mode = #tpu.pipeline_mode<synchronous>, transform_indices = @transform_2, window_bounds = array<i64: 2, 8>}, {pipeline_mode = #tpu.pipeline_mode<synchronous>, transform_indices = @transform_3, window_bounds = array<i64: 1, 128>}, {pipeline_mode = #tpu.pipeline_mode<synchronous>, transform_indices = @transform_4, window_bounds = array<i64: 2, 128>}]} {
    %c0_i32 = arith.constant 0 : i32
    %0 = arith.cmpi eq, %arg0, %c0_i32 : i32
    %1 = arith.extui %0 : i1 to i32
    %c0_i32_0 = arith.constant 0 : i32
    %2 = arith.cmpi ne, %1, %c0_i32_0 : i32
    scf.if %2 {
      %cst = arith.constant 0.000000e+00 : f32
      %10 = vector.broadcast %cst : f32 to vector<8x256xf32>
      %c0_8 = arith.constant 0 : index
      %c0_9 = arith.constant 0 : index
      %11 = vector.load %arg6[%c0_8, %c0_9] : memref<8x256xf32, #tpu.memory_space<vmem>>, vector<8x256xf32>
      tpu.vector_store %arg6[%c0_8, %c0_9], %10 {strides = array<i32>} : memref<8x256xf32, #tpu.memory_space<vmem>>, vector<8x256xf32>,
    } else {
    }
    %c0 = arith.constant 0 : index
    %c0_1 = arith.constant 0 : index
    %3 = vector.load %arg1[%c0, %c0_1] : memref<8x256xf32, #tpu.memory_space<vmem>>, vector<8x256xf32>
    %c0_2 = arith.constant 0 : index
    %c0_3 = arith.constant 0 : index
    %4 = vector.load %arg6[%c0_2, %c0_3] : memref<8x256xf32, #tpu.memory_space<vmem>>, vector<8x256xf32>
    %5 = arith.addf %4, %3 : vector<8x256xf32>
    %c0_4 = arith.constant 0 : index
    %c0_5 = arith.constant 0 : index
    %6 = vector.load %arg6[%c0_4, %c0_5] : memref<8x256xf32, #tpu.memory_space<vmem>>, vector<8x256xf32>
    tpu.vector_store %arg6[%c0_4, %c0_5], %5 {strides = array<i32>} : memref<8x256xf32, #tpu.memory_space<vmem>>, vector<8x256xf32>,
    %c0_i32_6 = arith.constant 0 : i32
    %7 = arith.cmpi eq, %arg0, %c0_i32_6 : i32
    %8 = arith.extui %7 : i1 to i32
    %c0_i32_7 = arith.constant 0 : i32
    %9 = arith.cmpi ne, %8, %c0_i32_7 : i32
    scf.if %9 {
      %c0_8 = arith.constant 0 : index
      %c0_9 = arith.constant 0 : index
      %10 = vector.load %arg6[%c0_8, %c0_9] : memref<8x256xf32, #tpu.memory_space<vmem>>, vector<8x256xf32>
      %cst = arith.constant dense<0.000000e+00> : vector<8xf32>
      %11 = vector.multi_reduction <add>, %10, %cst [1] : vector<8x256xf32> to vector<8xf32>
      %12 = vector.shape_cast %11 : vector<8xf32> to vector<8x1xf32>
      %c0_10 = arith.constant 0 : index
      %c0_11 = arith.constant 0 : index
      %13 = vector.load %arg2[%c0_10, %c0_11] : memref<8x128xf32, #tpu.memory_space<vmem>>, vector<8x128xf32>
      %14 = vector.broadcast %12 : vector<8x1xf32> to vector<8x128xf32>
      %15 = arith.mulf %14, %13 : vector<8x128xf32>
      %c0_12 = arith.constant 0 : index
      %c0_13 = arith.constant 0 : index
      %16 = vector.load %arg3[%c0_12, %c0_13] : memref<2x8xf32, #tpu.memory_space<vmem>>, vector<2x8xf32>
      %cst_14 = arith.constant dense<0.000000e+00> : vector<2x128xf32>
      %17 = tpu.matmul %16, %15, %cst_14 {dimension_numbers = #tpu.dot_dimension_numbers<[1], [0], [0], [1], [0, 0, 1, 1], [], []>} : vector<2x8xf32>, vector<8x128xf32>, vector<2x128xf32> -> vector<2x128xf32>
      %c0_15 = arith.constant 0 : index
      %c0_16 = arith.constant 0 : index
      %18 = vector.load %arg4[%c0_15, %c0_16] : memref<1x128xf32, #tpu.memory_space<vmem>>, vector<1x128xf32>
      %19 = vector.broadcast %18 : vector<1x128xf32> to vector<2x128xf32>
      %20 = arith.addf %17, %19 : vector<2x128xf32>
      %c0_17 = arith.constant 0 : index
      %c0_18 = arith.constant 0 : index
      %21 = vector.load %arg5[%c0_17, %c0_18] : memref<2x128xf32, #tpu.memory_space<vmem>>, vector<2x128xf32>
      tpu.vector_store %arg5[%c0_17, %c0_18], %20 {strides = array<i32>} : memref<2x128xf32, #tpu.memory_space<vmem>>, vector<2x128xf32>,
    } else {
    }
    return
  }
  func.func @transform_0(%arg0: i32) -> (i32, i32) {
    %c0_i32 = arith.constant 0 : i32
    %c0_i32_0 = arith.constant 0 : i32
    return %c0_i32, %arg0 : i32, i32
  }
  func.func @transform_1(%arg0: i32) -> (i32, i32) {
    %c0_i32 = arith.constant 0 : i32
    %c0_i32_0 = arith.constant 0 : i32
    %c0_i32_1 = arith.constant 0 : i32
    return %c0_i32, %c0_i32_0 : i32, i32
  }
  func.func @transform_2(%arg0: i32) -> (i32, i32) {
    %c0_i32 = arith.constant 0 : i32
    %c0_i32_0 = arith.constant 0 : i32
    %c0_i32_1 = arith.constant 0 : i32
    return %c0_i32, %c0_i32_0 : i32, i32
  }
  func.func @transform_3(%arg0: i32) -> (i32, i32) {
    %c0_i32 = arith.constant 0 : i32
    %c0_i32_0 = arith.constant 0 : i32
    %c0_i32_1 = arith.constant 0 : i32
    return %c0_i32, %c0_i32_0 : i32, i32
  }
  func.func @transform_4(%arg0: i32) -> (i32, i32) {
    %c0_i32 = arith.constant 0 : i32
    %c0_i32_0 = arith.constant 0 : i32
    %c0_i32_1 = arith.constant 0 : i32
    return %c0_i32, %c0_i32_0 : i32, i32
  }
}

</mosaic_0001>

<bundles_post_ra>
// kernel: tpu_custom_call.1
= control target key start
LH: loop header
LB: loop body
LE: loop exit
PB: predicated region body
PF: predicated region fallthrough
CT: control target
= control target key end

     0   :  { %9 = vsyncpa [#allocation4], 0  ;;  %s290_s0 = inlined_call_operand.hbm [shape: f32[8,256], index: 0, kind: input, shape index: {}]   ;;  %s291_s1 = inlined_call_operand.hbm [shape: f32[8,128], index: 1, kind: input, shape index: {}]   ;;  %s292_s2 = inlined_call_operand.vmem [shape: f32[2,8], index: 2, kind: input, shape index: {}]   ;;  %s293_s3 = inlined_call_operand.vmem [shape: f32[1,128], index: 3, kind: input, shape index: {}]   ;;  %s294_s4 = inlined_call_operand.hbm [shape: f32[2,128], index: 4, kind: output, shape index: {}]  }
   0x1   :  { %10 = vsyncpa [#allocation7], 0 }
   0x2   :  { %11 = vsyncpa [#allocation5], 0  ;;  %s245_s15 = smov [#allocation3]   ;;  %s246_s17 = smov [#allocation6]  }
   0x3   :  { %s18_s16 = sshll.u32 %s245_s15, 4  ;;  %s28_s18 = sshll.u32 %s246_s17, 4  ;;  %s19_s16 = int_to_ptr.vmem [resolvable:$true] %s18_s16  ;;  %s29_s18 = int_to_ptr.vmem [resolvable:$true] %s28_s18 }
   0x4   :  { %s187_s19 = scalar_lea.vmem %s19_s16, 256  ;;  %p192_p1 = scmp.lt.s32.totalorder %s19_s16, %s19_s16 }
   0x5   :  { %p188_p0 = scmp.ne.s32.totalorder %s19_s16, %s187_s19  ;;  %p193_p2 = scmp.lt.s32.totalorder %s187_s19, %s187_s19 }
   0x7   :  { %p194_p3 = por %p193_p2, %p192_p1 }
   0x9   :  { %p195_p4 = pnand %p194_p3, %p188_p0 }
   0xb   :  { %198 = shalt.err (!%p195_p4)
}
   0xc   :  { %21 = dma.hbm_to_vmem [thread:$0]  %s290_s0, 256, %s19_s16, [#allocation4]  }
   0xd   :  { %s207_s22 = scalar_lea.vmem %s29_s18, 128  ;;  %p212_p6 = scmp.lt.s32.totalorder %s29_s18, %s29_s18 }
   0xe   :  { %p208_p5 = scmp.ne.s32.totalorder %s29_s18, %s207_s22  ;;  %p213_p7 = scmp.lt.s32.totalorder %s207_s22, %s207_s22 }
  0x10   :  { %p214_p8 = por %p213_p7, %p212_p6 }
  0x12   :  { %p215_p9 = pnand %p214_p8, %p208_p5 }
  0x14   :  { %218 = shalt.err (!%p215_p9)
}
  0x15   :  { %31 = dma.hbm_to_vmem [thread:$0]  %s291_s1, 128, %s29_s18, [#allocation7]  }
  0x16   :  { %239 = dma.done.wait [#allocation4], 256  }
  0x17   :  { %240 = vsyncadd [#allocation4], 4294967040 }
  0x18   :  { %241 = dma.done.wait [#allocation7], 128  }
  0x19   :  { %242 = vsyncadd [#allocation7], 4294967168  ;;  %v48_v0 = vld [vmem:[#allocation3] sm:$0xff]  ;;  %v49_v1 = vld [vmem:[#allocation3 + $0x8] sm:$0xff]  ;;  %v247_v3 = vmov 0.0   ;;  %vm248_vm0 = vmmov 0  }
  0x1a   :  { %v61_v2 = vadd.f32 %v49_v1, %v48_v0  ;;  %169 = vmatprep.subr.mxu0 %v247_v3  ;;  %171 = vmatprep.mubr.msk.f32.mxu0 %vm248_vm0, %v247_v3  ;;  %v64_v4 = vld [vmem:[#allocation6] sm:$0xff]  ;;  %v66_v7 = vld [vmem:[%s292_s2] sm:$0x3]  ;;  %vm74_vm1 = vcmask 64512   ;;  %s249_s27 = smov [#allocation8]  }
  0x1b   :  { %v165_v8 = vld [vmem:[%s293_s3] ss:$0 sm:$0xff]  ;;  %s155_s28 = sshll.u32 %s249_s27, 4  ;;  %s156_s28 = int_to_ptr.vmem [resolvable:$true] %s155_s28 }
  0x1c   :  { %62 = vadd.xlane.f32.xlu0 %v61_v2  ;;  %s219_s29 = scalar_lea.vmem %s156_s28, 32  ;;  %p224_p11 = scmp.lt.s32.totalorder %s156_s28, %s156_s28 }
  0x1d   :  { %p220_p10 = scmp.ne.s32.totalorder %s156_s28, %s219_s29  ;;  %p225_p12 = scmp.lt.s32.totalorder %s219_s29, %s219_s29 }
  0x1f   :  { %p226_p13 = por %p225_p12, %p224_p11 }
  0x21   :  { %p227_p0 = pnand %p226_p13, %p220_p10 }
  0xa5   :  { %v63_v5 = vpop.xlane.xlu0 %62 }
  0xa6   :  { %v65_v6 = vmul.f32 %v64_v4, %v63_v5 }
  0xa8   :  { %170 = vmatpush3.msra.mxu0 %v65_v6 }
  0xa9   :  { %172 = vmatmul.mubr.msk.f32.vlgmr.msra.gmra.mxu0 %vm74_vm1, %v66_v7 }
 0x169   :  { %v144_v9 = vpop.f32.mrf.mxu0 }
 0x16a   :  { %v145_v10 = vadd.f32 %v165_v8, %v144_v9 }
 0x16b   :  { %v173_v11 = vpop.f32.mrf.mxu0 }
 0x16c   :  { %148 = vst [vmem:[#allocation8] sm:$0x3] %v145_v10 }
 0x16d   :  { %230 = shalt.err (!%p227_p0)
}
 0x16e   :  { %158 = dma.vmem_to_hbm [thread:$0]  %s156_s28, 32, %s294_s4, [#allocation5]  }
 0x16f   :  { %243 = dma.done.wait [#allocation5], 32  }
 0x170   :  { %244 = vsyncadd [#allocation5], 4294967264 }
 0x171   :  { %162 = vsyncpa [#allocation4], 1 }
 0x172   :  { %163 = vsyncpa [#allocation7], 1 }
 0x173   :  { %164 = vsyncpa [#allocation5], 1 }

</bundles_post_ra>
